<compile_context>
chip_gen: v7x
topology: tpu7x:2x2x1
jax: 0.10.0
libtpu: 0.0.40
codegen_flags: <defaults>
</compile_context>

<pallas_src>
import functools

import jax
import jax.numpy as jnp
from jax import lax
from jax.experimental import pallas as pl
from jax.experimental.pallas import tpu as pltpu


def residual_block_kernel(x_ref, w1r_ref, w2_ref, br_ref, o_ref,
                          xe_ref, h1e_ref, *, K, dilation, pad):
    _, H, TL = o_ref.shape
    cin_p = x_ref.shape[1]
    d = dilation
    j = pl.program_id(1)
    last = pl.num_programs(1) - 1

    if pad > 0:
        @pl.when(j == 0)
        def _():
            # Zeroed carries == the causal left padding of x and h1.
            xe_ref[:, :pad] = jnp.zeros((cin_p, pad), xe_ref.dtype)
            h1e_ref[:, :pad] = jnp.zeros((H, pad), h1e_ref.dtype)

    x_t = x_ref[0]                                    # (cin_p, TL)
    xe_ref[:, pad:] = x_t

    # conv1 + 1x1 residual conv fused into a single MXU matmul over a shared
    # im2col RHS (tap t lives at lane offset t*d of the halo-extended buffer;
    # the residual weight occupies only the last-tap columns, i.e. x itself).
    taps = [xe_ref[:, t * d:t * d + TL] for t in range(K)]
    x1 = taps[0] if K == 1 else jnp.concatenate(taps, axis=0)   # (K*cin_p, TL)
    hr = jnp.dot(w1r_ref[...], x1, preferred_element_type=jnp.float32)  # (2H,TL)
    h1 = jnp.maximum(hr[:H], 0.0)         # ReLU; dropout == identity (eval)
    res = hr[H:] + br_ref[...]            # residual 1x1 conv + bias, f32

    # conv2: K accumulating matmuls on lane-shifted views of the h1 halo
    # scratch -- no (K*H, TL) im2col materialization, no lane zero-concats.
    h1e_ref[:, pad:] = h1.astype(h1e_ref.dtype)
    h2 = jnp.dot(w2_ref[:, :H], h1e_ref[:, 0:TL],
                 preferred_element_type=jnp.float32)
    for t in range(1, K):
        h2 = h2 + jnp.dot(w2_ref[:, t * H:(t + 1) * H],
                          h1e_ref[:, t * d:t * d + TL],
                          preferred_element_type=jnp.float32)
    h2 = jnp.maximum(h2, 0.0)             # ReLU; dropout == identity (eval)

    o_ref[0] = (h2 + res).astype(o_ref.dtype)

    if pad > 0:
        @pl.when(j != last)
        def _():
            # Carry the last `pad` columns of x and h1 into the next L tile.
            xe_ref[:, :pad] = xe_ref[:, TL:TL + pad]
            h1e_ref[:, :pad] = h1e_ref[:, TL:TL + pad]


def _weight_norm(v, g):
    # nn.utils.weight_norm with default dim=0: w = g * v / ||v||, norm over the
    # (in_channels, kernel) dims per output channel.  No epsilon, matching
    # PyTorch semantics (an all-zero v row would produce inf/nan there too).
    n = jnp.sqrt(jnp.sum(v * v, axis=(1, 2), keepdims=True))
    return g[:, None, None] * v / n


def _choose_tl(L, pad, cin_p, H, b_c, b_o, tl_cap):
    """Largest lane-dense sequence tile fitting a conservative VMEM budget."""
    budget = 48 << 20          # headroom vs v7x's 64 MiB per-TensorCore VMEM

    def vmem_bytes(tl):
        return (2 * cin_p * tl * b_c                 # double-buffered input
                + 2 * H * tl * b_o                   # double-buffered output
                + (cin_p + H) * (tl + pad) * b_c     # xe / h1e halo scratches
                + 6 * H * tl * 4)                    # f32 temporaries headroom

    if L <= tl_cap and vmem_bytes(L) <= budget:
        return L, vmem_bytes(L)                      # single tile, full sequence
    tl = max(128, (min(tl_cap, L) // 128) * 128)
    while tl > 128 and vmem_bytes(tl) > budget:
        tl -= 128
    return tl, vmem_bytes(tl)


def residual_block(x_ncl, v1, g1, v2, g2, wr, br, dilation, *,
                   compute_dtype=jnp.bfloat16, out_dtype=jnp.float32,
                   tl_cap=1024):
    """x_ncl: (B, Cin, L) float32 (PyTorch NCL). Returns (B, H, L) out_dtype."""
    # TODO(synk): the Cin == H case (no residual_conv in the module) is not
    # handled here; this module always has H = 4*Cin so residual_conv exists.
    w1e = _weight_norm(v1, g1)                        # (H, Cin, K)
    w2e = _weight_norm(v2, g2)                        # (H, H,  K)
    B, Cin, L = x_ncl.shape
    H, _, K = w1e.shape
    pad = (K - 1) * dilation

    b_c = jnp.dtype(compute_dtype).itemsize
    b_o = jnp.dtype(out_dtype).itemsize
    sub = 8 if b_c == 4 else 16                       # sublane packing multiple
    cin_p = -(-Cin // sub) * sub                      # pad Cin for MXU alignment

    TL, vmem_est = _choose_tl(L, pad, cin_p, H, b_c, b_o, tl_cap)
    NT = -(-L // TL)
    Lp = NT * TL
    assert NT == 1 or TL >= pad, "sequence tile must cover the causal halo"

    # Right-padding L with zeros is safe: the convs are causal, so output cols
    # [0, L) never see the padded tail (which is sliced off below).
    xp = x_ncl
    if cin_p != Cin or Lp != L:
        xp = jnp.pad(xp, ((0, 0), (0, cin_p - Cin), (0, Lp - L)))
    xp = xp.astype(compute_dtype)

    # Fused conv1 + residual weight: W1R[h, t*cin_p + c] = w1[h, c, t] for the
    # top H rows; the bottom H rows are zero except the last-tap Cin columns,
    # which hold the 1x1 residual conv weight (last tap == current x column).
    w1_t = jnp.transpose(w1e, (0, 2, 1))                           # (H, K, Cin)
    w1_p = jnp.pad(w1_t, ((0, 0), (0, 0), (0, cin_p - Cin)))       # (H, K, cin_p)
    wr_p = jnp.zeros((H, K, cin_p), w1_p.dtype).at[:, K - 1, :Cin].set(wr[:, :, 0])
    w1r_f = jnp.concatenate([w1_p, wr_p], axis=0).reshape(
        2 * H, K * cin_p).astype(compute_dtype)                    # (2H, K*cin_p)
    w2_f = jnp.transpose(w2e, (0, 2, 1)).reshape(H, K * H).astype(compute_dtype)
    br_f = br.reshape(H, 1).astype(jnp.float32)

    w_bytes = (2 * H * K * cin_p + H * K * H + H) * 4
    vmem_limit = int(min(max(vmem_est + w_bytes + (4 << 20), 32 << 20), 64 << 20))

    kernel = functools.partial(residual_block_kernel, K=K, dilation=dilation,
                               pad=pad)

    # TODO(synk): for B == 1 on v7x (2 TensorCores) the single 'parallel' axis
    # has one step and a core idles; switch to a halo-recompute scheme with
    # pl.Element-offset overlapping x blocks so L tiles can be 'parallel'.
    out = pl.pallas_call(
        kernel,
        out_shape=jax.ShapeDtypeStruct((B, H, Lp), out_dtype),
        grid=(B, NT),
        in_specs=[
            pl.BlockSpec((1, cin_p, TL), lambda b, j: (b, 0, j)),
            pl.BlockSpec((2 * H, K * cin_p), lambda b, j: (0, 0)),
            pl.BlockSpec((H, K * H), lambda b, j: (0, 0)),
            pl.BlockSpec((H, 1), lambda b, j: (0, 0)),
        ],
        out_specs=pl.BlockSpec((1, H, TL), lambda b, j: (b, 0, j)),
        scratch_shapes=[
            pltpu.VMEM((cin_p, TL + pad), compute_dtype),   # x halo buffer
            pltpu.VMEM((H, TL + pad), compute_dtype),       # h1 halo buffer
        ],
        compiler_params=pltpu.CompilerParams(
            dimension_semantics=("parallel", "arbitrary"),
            vmem_limit_bytes=vmem_limit),
    )(xp, w1r_f, w2_f, br_f)

    if Lp != L:
        out = out[:, :, :L]
    return out


def residual_block_reference(x, v1, g1, v2, g2, wr, br, dilation):
    """Pure-JAX reference mirroring the PyTorch forward (eval mode)."""
    w1e = _weight_norm(v1, g1)
    w2e = _weight_norm(v2, g2)
    K = w1e.shape[-1]
    pad = (K - 1) * dilation
    dn = ('NCH', 'OIH', 'NCH')
    h = lax.conv_general_dilated(x, w1e, (1,), [(pad, pad)],
                                 rhs_dilation=(dilation,), dimension_numbers=dn)
    if pad:
        h = h[:, :, :-pad]
    h = jax.nn.relu(h)
    h = lax.conv_general_dilated(h, w2e, (1,), [(pad, pad)],
                                 rhs_dilation=(dilation,), dimension_numbers=dn)
    if pad:
        h = h[:, :, :-pad]
    h = jax.nn.relu(h)
    res = lax.conv_general_dilated(x, wr, (1,), [(0, 0)],
                                   dimension_numbers=dn) + br[None, :, None]
    return h + res


if __name__ == "__main__":
    # Shapes consistent with the module: input_features=4,
    # hidden_features=input_features*4=16, kernel_size=3, seq=training_span=32.
    B, Cin, L = 2, 4, 32
    H = Cin * 4
    K = 3
    dilation = 2

    key = jax.random.PRNGKey(0)
    k1, k2, k3, k4, k5, k6, k7 = jax.random.split(key, 7)

    x = jax.random.normal(k1, (B, Cin, L), dtype=jnp.float32)
    # weight_norm parametrization: direction v (conv weight shape) + gain g.
    v1 = jax.random.normal(k2, (H, Cin, K), dtype=jnp.float32) * 0.2
    g1 = jax.random.uniform(k3, (H,), dtype=jnp.float32, minval=0.5, maxval=1.5)
    v2 = jax.random.normal(k4, (H, H, K), dtype=jnp.float32) * 0.2
    g2 = jax.random.uniform(k5, (H,), dtype=jnp.float32, minval=0.5, maxval=1.5)
    # residual 1x1 conv (Cin != H, so it exists), with bias.
    kr1, kr2 = jax.random.split(k6)
    wr = jax.random.normal(kr1, (H, Cin, 1), dtype=jnp.float32) * 0.2
    br = jax.random.normal(kr2, (H,), dtype=jnp.float32) * 0.1

    # TODO(synk): nn.Dropout(0.2) is treated as identity (eval-mode semantics);
    # training-mode stochastic dropout is not reproduced.

    ref = residual_block_reference(x, v1, g1, v2, g2, wr, br, dilation)

    # f32 compute path, single L tile (tight check).
    out = residual_block(x, v1, g1, v2, g2, wr, br, dilation,
                         compute_dtype=jnp.float32)
    out = jax.block_until_ready(out)
    assert out.shape == (B, H, L), out.shape
    assert jnp.allclose(out, ref, atol=1e-4, rtol=1e-4), \
        float(jnp.max(jnp.abs(out - ref)))

    # bf16 MXU-input path (default; f32 accumulation), loose check.
    out_bf16 = residual_block(x, v1, g1, v2, g2, wr, br, dilation)
    out_bf16 = jax.block_until_ready(out_bf16)
    assert jnp.allclose(out_bf16, ref, atol=5e-2, rtol=5e-2), \
        float(jnp.max(jnp.abs(out_bf16 - ref)))

    # Multi-tile path: L not a multiple of the 128-wide lane-dense tile, which
    # exercises the carried causal halo across L tiles and the right-pad/slice.
    L2 = 200
    x2 = jax.random.normal(k7, (B, Cin, L2), dtype=jnp.float32)
    ref2 = residual_block_reference(x2, v1, g1, v2, g2, wr, br, dilation)
    out2 = residual_block(x2, v1, g1, v2, g2, wr, br, dilation,
                          compute_dtype=jnp.float32, tl_cap=128)
    out2 = jax.block_until_ready(out2)
    assert out2.shape == (B, H, L2), out2.shape
    assert jnp.allclose(out2, ref2, atol=1e-4, rtol=1e-4), \
        float(jnp.max(jnp.abs(out2 - ref2)))

    print("KERNEL_OK")
</pallas_src>

<mosaic_0001>
module attributes {stable_mosaic.version = 11 : i64} {
  func.func @residual_block_kernel(%arg0: i32, %arg1: i32, %arg2: memref<1x8x32xf32, #tpu.memory_space<vmem>>, %arg3: memref<32x24xf32, #tpu.memory_space<vmem>>, %arg4: memref<16x48xf32, #tpu.memory_space<vmem>>, %arg5: memref<16x1xf32, #tpu.memory_space<vmem>>, %arg6: memref<1x16x32xf32, #tpu.memory_space<vmem>>, %arg7: memref<8x36xf32, #tpu.memory_space<vmem>>, %arg8: memref<16x36xf32, #tpu.memory_space<vmem>>) attributes {dimension_semantics = [#tpu.dimension_semantics<parallel>, #tpu.dimension_semantics<arbitrary>], iteration_bounds = array<i64: 2, 1>, scalar_prefetch = 0 : i64, scratch_operands = 2 : i64, tpu.core_type = #tpu.core_type<tc>, window_params = [{transform_indices = @transform_0, window_bounds = array<i64: 1, 8, 32>}, {pipeline_mode = #tpu.pipeline_mode<synchronous>, transform_indices = @transform_1, window_bounds = array<i64: 32, 24>}, {pipeline_mode = #tpu.pipeline_mode<synchronous>, transform_indices = @transform_2, window_bounds = array<i64: 16, 48>}, {pipeline_mode = #tpu.pipeline_mode<synchronous>, transform_indices = @transform_3, window_bounds = array<i64: 16, 1>}, {transform_indices = @transform_4, window_bounds = array<i64: 1, 16, 32>}]} {
    %c0_i32 = arith.constant 0 : i32
    %0 = arith.cmpi eq, %arg1, %c0_i32 : i32
    %1 = arith.extui %0 : i1 to i32
    %c0_i32_0 = arith.constant 0 : i32
    %2 = arith.cmpi ne, %1, %c0_i32_0 : i32
    scf.if %2 {
      %cst_35 = arith.constant 0.000000e+00 : f32
      %40 = vector.broadcast %cst_35 : f32 to vector<8x4xf32>
      %c0_36 = arith.constant 0 : index
      %c0_37 = arith.constant 0 : index
      %41 = vector.load %arg7[%c0_36, %c0_37] : memref<8x36xf32, #tpu.memory_space<vmem>>, vector<8x4xf32>
      tpu.vector_store %arg7[%c0_36, %c0_37], %40 {strides = array<i32>} : memref<8x36xf32, #tpu.memory_space<vmem>>, vector<8x4xf32>,
      %cst_38 = arith.constant 0.000000e+00 : f32
      %42 = vector.broadcast %cst_38 : f32 to vector<16x4xf32>
      %c0_39 = arith.constant 0 : index
      %c0_40 = arith.constant 0 : index
      %43 = vector.load %arg8[%c0_39, %c0_40] : memref<16x36xf32, #tpu.memory_space<vmem>>, vector<16x4xf32>
      tpu.vector_store %arg8[%c0_39, %c0_40], %42 {strides = array<i32>} : memref<16x36xf32, #tpu.memory_space<vmem>>, vector<16x4xf32>,
    } else {
    }
    %c0 = arith.constant 0 : index
    %c0_1 = arith.constant 0 : index
    %c0_2 = arith.constant 0 : index
    %3 = vector.load %arg2[%c0, %c0_1, %c0_2] : memref<1x8x32xf32, #tpu.memory_space<vmem>>, vector<1x8x32xf32>
    %4 = vector.shape_cast %3 : vector<1x8x32xf32> to vector<8x32xf32>
    %c0_3 = arith.constant 0 : index
    %c4 = arith.constant 4 : index
    %5 = vector.load %arg7[%c0_3, %c4] : memref<8x36xf32, #tpu.memory_space<vmem>>, vector<8x32xf32>
    tpu.vector_store %arg7[%c0_3, %c4], %4 {strides = array<i32>} : memref<8x36xf32, #tpu.memory_space<vmem>>, vector<8x32xf32>,
    %c0_4 = arith.constant 0 : index
    %c0_5 = arith.constant 0 : index
    %6 = vector.load %arg7[%c0_4, %c0_5] : memref<8x36xf32, #tpu.memory_space<vmem>>, vector<8x32xf32>
    %c0_6 = arith.constant 0 : index
    %c2 = arith.constant 2 : index
    %7 = vector.load %arg7[%c0_6, %c2] : memref<8x36xf32, #tpu.memory_space<vmem>>, vector<8x32xf32>
    %c0_7 = arith.constant 0 : index
    %c4_8 = arith.constant 4 : index
    %8 = vector.load %arg7[%c0_7, %c4_8] : memref<8x36xf32, #tpu.memory_space<vmem>>, vector<8x32xf32>
    %9 = tpu.concatenate %6, %7, %8 in 0 : vector<8x32xf32>, vector<8x32xf32>, vector<8x32xf32> -> vector<24x32xf32>
    %c0_9 = arith.constant 0 : index
    %c0_10 = arith.constant 0 : index
    %10 = vector.load %arg3[%c0_9, %c0_10] : memref<32x24xf32, #tpu.memory_space<vmem>>, vector<32x24xf32>
    %cst = arith.constant dense<0.000000e+00> : vector<32x32xf32>
    %11 = tpu.matmul %10, %9, %cst {dimension_numbers = #tpu.dot_dimension_numbers<[1], [0], [0], [1], [0, 0, 1, 1], [], []>} : vector<32x24xf32>, vector<24x32xf32>, vector<32x32xf32> -> vector<32x32xf32>
    %12 = vector.extract_strided_slice %11 {offsets = [0, 0], sizes = [16, 32], strides = [1, 1]} : vector<32x32xf32> to vector<16x32xf32>
    %cst_11 = arith.constant 0.000000e+00 : f32
    %13 = vector.broadcast %cst_11 : f32 to vector<16x32xf32>
    %14 = arith.maximumf %12, %13 : vector<16x32xf32>
    %15 = vector.extract_strided_slice %11 {offsets = [16, 0], sizes = [16, 32], strides = [1, 1]} : vector<32x32xf32> to vector<16x32xf32>
    %c0_12 = arith.constant 0 : index
    %c0_13 = arith.constant 0 : index
    %16 = vector.load %arg5[%c0_12, %c0_13] : memref<16x1xf32, #tpu.memory_space<vmem>>, vector<16x1xf32>
    %17 = vector.broadcast %16 : vector<16x1xf32> to vector<16x32xf32>
    %18 = arith.addf %15, %17 : vector<16x32xf32>
    %c0_14 = arith.constant 0 : index
    %c4_15 = arith.constant 4 : index
    %19 = vector.load %arg8[%c0_14, %c4_15] : memref<16x36xf32, #tpu.memory_space<vmem>>, vector<16x32xf32>
    tpu.vector_store %arg8[%c0_14, %c4_15], %14 {strides = array<i32>} : memref<16x36xf32, #tpu.memory_space<vmem>>, vector<16x32xf32>,
    %c0_16 = arith.constant 0 : index
    %c0_17 = arith.constant 0 : index
    %20 = vector.load %arg4[%c0_16, %c0_17] : memref<16x48xf32, #tpu.memory_space<vmem>>, vector<16x16xf32>
    %c0_18 = arith.constant 0 : index
    %c0_19 = arith.constant 0 : index
    %21 = vector.load %arg8[%c0_18, %c0_19] : memref<16x36xf32, #tpu.memory_space<vmem>>, vector<16x32xf32>
    %cst_20 = arith.constant dense<0.000000e+00> : vector<16x32xf32>
    %22 = tpu.matmul %20, %21, %cst_20 {dimension_numbers = #tpu.dot_dimension_numbers<[1], [0], [0], [1], [0, 0, 1, 1], [], []>} : vector<16x16xf32>, vector<16x32xf32>, vector<16x32xf32> -> vector<16x32xf32>
    %c0_21 = arith.constant 0 : index
    %c16 = arith.constant 16 : index
    %23 = vector.load %arg4[%c0_21, %c16] : memref<16x48xf32, #tpu.memory_space<vmem>>, vector<16x16xf32>
    %c0_22 = arith.constant 0 : index
    %c2_23 = arith.constant 2 : index
    %24 = vector.load %arg8[%c0_22, %c2_23] : memref<16x36xf32, #tpu.memory_space<vmem>>, vector<16x32xf32>
    %cst_24 = arith.constant dense<0.000000e+00> : vector<16x32xf32>
    %25 = tpu.matmul %23, %24, %cst_24 {dimension_numbers = #tpu.dot_dimension_numbers<[1], [0], [0], [1], [0, 0, 1, 1], [], []>} : vector<16x16xf32>, vector<16x32xf32>, vector<16x32xf32> -> vector<16x32xf32>
    %26 = arith.addf %22, %25 : vector<16x32xf32>
    %c0_25 = arith.constant 0 : index
    %c32 = arith.constant 32 : index
    %27 = vector.load %arg4[%c0_25, %c32] : memref<16x48xf32, #tpu.memory_space<vmem>>, vector<16x16xf32>
    %c0_26 = arith.constant 0 : index
    %c4_27 = arith.constant 4 : index
    %28 = vector.load %arg8[%c0_26, %c4_27] : memref<16x36xf32, #tpu.memory_space<vmem>>, vector<16x32xf32>
    %cst_28 = arith.constant dense<0.000000e+00> : vector<16x32xf32>
    %29 = tpu.matmul %27, %28, %cst_28 {dimension_numbers = #tpu.dot_dimension_numbers<[1], [0], [0], [1], [0, 0, 1, 1], [], []>} : vector<16x16xf32>, vector<16x32xf32>, vector<16x32xf32> -> vector<16x32xf32>
    %30 = arith.addf %26, %29 : vector<16x32xf32>
    %cst_29 = arith.constant 0.000000e+00 : f32
    %31 = vector.broadcast %cst_29 : f32 to vector<16x32xf32>
    %32 = arith.maximumf %30, %31 : vector<16x32xf32>
    %33 = arith.addf %32, %18 : vector<16x32xf32>
    %c0_30 = arith.constant 0 : index
    %c0_31 = arith.constant 0 : index
    %c0_32 = arith.constant 0 : index
    %34 = vector.load %arg6[%c0_30, %c0_31, %c0_32] : memref<1x16x32xf32, #tpu.memory_space<vmem>>, vector<1x16x32xf32>
    %35 = vector.shape_cast %34 : vector<1x16x32xf32> to vector<16x32xf32>
    %36 = vector.shape_cast %33 : vector<16x32xf32> to vector<1x16x32xf32>
    tpu.vector_store %arg6[%c0_30, %c0_31, %c0_32], %36 {strides = array<i32>} : memref<1x16x32xf32, #tpu.memory_space<vmem>>, vector<1x16x32xf32>,
    %c0_i32_33 = arith.constant 0 : i32
    %37 = arith.cmpi ne, %arg1, %c0_i32_33 : i32
    %38 = arith.extui %37 : i1 to i32
    %c0_i32_34 = arith.constant 0 : i32
    %39 = arith.cmpi ne, %38, %c0_i32_34 : i32
    scf.if %39 {
      %c0_35 = arith.constant 0 : index
      %c32_36 = arith.constant 32 : index
      %40 = vector.load %arg7[%c0_35, %c32_36] : memref<8x36xf32, #tpu.memory_space<vmem>>, vector<8x4xf32>
      %c0_37 = arith.constant 0 : index
      %c0_38 = arith.constant 0 : index
      %41 = vector.load %arg7[%c0_37, %c0_38] : memref<8x36xf32, #tpu.memory_space<vmem>>, vector<8x4xf32>
      tpu.vector_store %arg7[%c0_37, %c0_38], %40 {strides = array<i32>} : memref<8x36xf32, #tpu.memory_space<vmem>>, vector<8x4xf32>,
      %c0_39 = arith.constant 0 : index
      %c32_40 = arith.constant 32 : index
      %42 = vector.load %arg8[%c0_39, %c32_40] : memref<16x36xf32, #tpu.memory_space<vmem>>, vector<16x4xf32>
      %c0_41 = arith.constant 0 : index
      %c0_42 = arith.constant 0 : index
      %43 = vector.load %arg8[%c0_41, %c0_42] : memref<16x36xf32, #tpu.memory_space<vmem>>, vector<16x4xf32>
      tpu.vector_store %arg8[%c0_41, %c0_42], %42 {strides = array<i32>} : memref<16x36xf32, #tpu.memory_space<vmem>>, vector<16x4xf32>,
    } else {
    }
    return
  }
  func.func @transform_0(%arg0: i32, %arg1: i32) -> (i32, i32, i32) {
    %c0_i32 = arith.constant 0 : i32
    %c0_i32_0 = arith.constant 0 : i32
    return %arg0, %c0_i32, %arg1 : i32, i32, i32
  }
  func.func @transform_1(%arg0: i32, %arg1: i32) -> (i32, i32) {
    %c0_i32 = arith.constant 0 : i32
    %c0_i32_0 = arith.constant 0 : i32
    %c0_i32_1 = arith.constant 0 : i32
    return %c0_i32, %c0_i32_0 : i32, i32
  }
  func.func @transform_2(%arg0: i32, %arg1: i32) -> (i32, i32) {
    %c0_i32 = arith.constant 0 : i32
    %c0_i32_0 = arith.constant 0 : i32
    %c0_i32_1 = arith.constant 0 : i32
    return %c0_i32, %c0_i32_0 : i32, i32
  }
  func.func @transform_3(%arg0: i32, %arg1: i32) -> (i32, i32) {
    %c0_i32 = arith.constant 0 : i32
    %c0_i32_0 = arith.constant 0 : i32
    %c0_i32_1 = arith.constant 0 : i32
    return %c0_i32, %c0_i32_0 : i32, i32
  }
  func.func @transform_4(%arg0: i32, %arg1: i32) -> (i32, i32, i32) {
    %c0_i32 = arith.constant 0 : i32
    %c0_i32_0 = arith.constant 0 : i32
    return %arg0, %c0_i32, %arg1 : i32, i32, i32
  }
}

</mosaic_0001>

<bundles_post_ra>
// kernel: tpu_custom_call.1
= control target key start
LH: loop header
LB: loop body
LE: loop exit
PB: predicated region body
PF: predicated region fallthrough
CT: control target
= control target key end

     0   :  { %9 = vsyncpa [#allocation5], 0  ;;  %s1199_s0 = inlined_call_operand.vmem [shape: f32[2,8,32], index: 0, kind: input, shape index: {}]   ;;  %s1200_s1 = inlined_call_operand.vmem [shape: f32[32,24], index: 1, kind: input, shape index: {}]   ;;  %s1201_s2 = inlined_call_operand.vmem [shape: f32[16,48], index: 2, kind: input, shape index: {}]   ;;  %s1202_s3 = inlined_call_operand.vmem [shape: f32[16,1], index: 3, kind: input, shape index: {}]   ;;  %s1203_s4 = inlined_call_operand.hbm [shape: f32[2,16,32], index: 4, kind: output, shape index: {}]  }
   0x1   :  { %11 = vsyncpa [#allocation5 + $0x1], 0  ;;  %s1043_s15 = smov 0   ;;  %s1045_s16 = smov 0  }
   0x2   :  { %s1047_s17 = smov 0   ;;  %s1049_s18 = smov 0  }
   0x3   :  { %s1051_s19 = smov 0   ;;  %s1053_s20 = smov 0  }
   0x4 LB: > { %s757_s21 = sadd.s32 4294967295, %s1006_s20   ;;  %s758_s22 = sadd.s32 4294967294, %s1006_s20   ;;  %s1006_s20 = sphi %s1053_s20, %s17_s20   ;;  %s1002_s19 = sphi %s1051_s19, %s1210_s19   ;;  %s998_s18 = sphi %s1049_s18, %s1209_s18   ;;  %s994_s17 = sphi %s1047_s17, %s1208_s17   ;;  %s990_s16 = sphi %s1045_s16, %s1207_s16   ;;  %s986_s15 = sphi %s1043_s15, %s1206_s15  }
   0x5   : > { %s29_s23 = sadd.s32 1, %s1002_s19  ;;  %s129_s24 = sadd.s32 1, %s994_s17 }
   0x6   : > { %p31_p0 = scmp.ge.s32.totalorder %s29_s23, 2  ;;  %p139_p1 = scmp.ne.s32.totalorder %s994_s17, %s990_s16 }
   0x7   : > { %p140_p2 = scmp.eq.s32.totalorder %s757_s21, 1  ;;  %p145_p3 = scmp.ne.s32.totalorder %s990_s16, %s986_s15 }
   0x8   : > { %s1212_s23 = smov (%p31_p0, %s29_s23), 0  ;;  %p146_p5 = scmp.eq.s32.totalorder %s758_s22, 1 }
   0x9   : > { %p1083_p4 = por %p140_p2, %p139_p1  ;;  %s124_s26 = ssub.s32 %s1002_s19, %s1212_s23 }
   0xa   : > { %p761_p6 = scmp.ge.s32.totalorder %s1006_s20, 1  ;;  %p127_p7 = scmp.eq.s32.totalorder %s124_s26, 0 }
   0xb   : > { %p1090_p8 = por %p146_p5, %p145_p3  ;;  %p183_p9 = scmp.lt.s32.totalorder %s1006_s20, 3 }
   0xc   : > { %s1096_s28 = scalar_select %p127_p7, %s994_s17, %s129_s24  }
   0xd   : > { %p184_p10 = pnand %p761_p6, %p183_p9 }
   0xe   : > { %p211_p11 = scmp.lt.s32.totalorder (!%p184_p10), %s998_s18, 1  ;;  %vm222_vm0 = vcmask (!%p184_p10), 31744   ;;  %v1008_v0 = vmov (!%p184_p10), 0.0   ;;  %s1009_s8 = smov (!%p184_p10), 4   ;;  %vm231_vm1 = vcmask (!%p184_p10), 293920   ;;  %v241_v3 = vld [vmem:[%s1200_s1] sm:$0xff] (!%p184_p10) }
   0xf   : > { %187 = sbr.rel (%p184_p10) target bundleno = 984 (0x3d8), region = 36  ;;  %223 = vst.msk [vmem:[#allocation2] sm:$0xff] (!%p184_p10), %vm222_vm0, %v1008_v0  ;;  %224 = vst.msk [vmem:[#allocation3] sm:$0xff] (!%p184_p10), %vm222_vm0, %v1008_v0  ;;  %vm245_vm2 = vcmask (!%p184_p10), 195584   ;;  %s1010_s11 = smov (!%p184_p10), 124   ;;  %v242_v8 = vld [vmem:[%s1200_s1 + $0x8] sm:$0xff] (!%p184_p10) }
  0x10   : > { %225 = vst.msk [vmem:[#allocation3 + $0x8] sm:$0xff] (!%p184_p10), %vm222_vm0, %v1008_v0  ;;  %805 = vmatprep.mubr.msk.f32.mxu0 (!%p184_p10), %vm245_vm2, %v241_v3  ;;  %s1011_s12 = smov (!%p184_p10), 126   ;;  %v369_v13 = vld [vmem:[%s1201_s2] sm:$0xff] (!%p184_p10)  ;;  %s1012_s24 = smov (!%p184_p10), 112   ;;  %vm387_vm3 = vcmask (!%p184_p10), 130048   ;;  %v370_v21 = vld [vmem:[%s1201_s2 + $0x8] sm:$0xff] (!%p184_p10) }
  0x11   : > { %v243_v22 = vld [vmem:[%s1200_s1 + $0x10] sm:$0xff] (!%p184_p10)  ;;  %v244_v23 = vld [vmem:[%s1200_s1 + $0x18] sm:$0xff] (!%p184_p10)  ;;  %v346_v24 = vld [vmem:[%s1202_s3 + $0x8] sm:$0xff] (!%p184_p10)  ;;  %v1014_v26 = vmov (!%p184_p10), 0   ;;  %s208_s13 = sand.u32 (!%p184_p10), 1, %s990_s16   ;;  %vm641_vm4 = vcmask (!%p184_p10), 261120  }
  0x12   : > { %v345_v25 = vld [vmem:[%s1202_s3] sm:$0xff] (!%p184_p10)  ;;  %927 = vset.pattern.permute.xlu0 (!%p184_p10), %v1014_v26  ;;  %926 = vset.pattern.permute.xlu1 (!%p184_p10), %v1014_v26  ;;  %s762_s14 = sshll.u32 (!%p184_p10), %s208_s13, 4  ;;  %s1153_s5 = scalar_lea.sflag (!%p184_p10), [#allocation5], %s208_s13 }
  0x13   : > { %s210_s21 = scalar_lea.vmem (!%p184_p10), [#allocation4], %s762_s14  ;;  %s1015_s6 = smov (!%p184_p10), [#allocation4]  }
  0x14   : > { %s682_s22 = sshll.u32 (!%p184_p10), %s210_s21, 4  ;;  %s1151_s22 = int_to_ptr.vmem [resolvable:$true] %s682_s22 }
  0x16   : > { %s212_s29 = scalar_select %p211_p11, %s998_s18, 1 }
  0x18   : > { %s763_s30 = sshll.u32 %s212_s29, 3 }
  0x19   : > { %s217_s7 = scalar_lea.vmem %s1199_s0, %s763_s30  ;;  %s1013_s30 = smov 96  }
  0x1a   : > { %v226_v1 = vld [vmem:[%s217_s7] sm:$0xff]  ;;  %s932_s7 = sshll.u32 %s1015_s6, 4  ;;  %s933_s7 = int_to_ptr.vmem [resolvable:$false] %s932_s7 }
  0x1b   : > { %228 = vrot.lane.b32.xlu0 %v226_v1, %s1009_s8  ;;  %p935_p1 = scmp.lt.s32.totalorder %s1151_s22, %s933_s7 }
  0x8d   : > { %v229_v2 = vpop.permute.xlu0 %228 }
  0x8e   : > { %232 = vst.msk [vmem:[#allocation2] sm:$0xff] %vm231_vm1, %v229_v2 }
  0x95   : > { %v233_v4 = vld [vmem:[#allocation2] sm:$0xff] }
  0x96   : > { %238 = vrot.lane.b32.xlu1 %v233_v4, %s1010_s11  ;;  %235 = vrot.lane.b32.xlu0 %v233_v4, %s1011_s12 }
 0x108   : > { %v236_v5 = vpop.permute.xlu0 %235  ;;  %v239_v7 = vpop.permute.xlu1 %238 }
 0x109   : > { %v832_v6 = vpack.c.bf16 %v236_v5, %v233_v4 }
 0x10b   : > { %833 = vmatprep.subr.bf16.mxu0 %v832_v6 }
 0x10c   : > { %835 = vmatpush3.bf16.msra.mxu0 %v832_v6 }
 0x10d   : > { %803 = vmatprep.subr.mxu0 %v239_v7 }
 0x110   : > { %804 = vmatpush3.msra.mxu0 %v239_v7 }
 0x111   : > { %806 = vmatmul.mubr.msk.f32.vlgmr.msra.gmra.mrb[0].mxu0 %vm245_vm2, %v242_v8 }
 0x112   : > { %808 = vmatprep.mubr.msk.f32.mxu0 %vm245_vm2, %v243_v22 }
 0x115   : > { %809 = vmatmul.mubr.msk.f32.gmra.mrb[2].mxu0 %vm245_vm2, %v244_v23 }
 0x1e4   : > { %v807_v9 = vpop.f32.mrb[0].mxu0 }
 0x1e5   : > { %v344_v10 = vmax.f32 %v807_v9, 0.0  ;;  %v324_v11 = vpop.f32.mrb[1].mxu0 }
 0x1e6   : > { %v343_v12 = vmax.f32 %v324_v11, 0.0 }
 0x1e7   : > { %363 = vrot.lane.b32.xlu0 %v344_v10, %s1009_s8 }
 0x1e8   : > { %361 = vrot.lane.b32.xlu1 %v343_v12, %s1009_s8  ;;  %v810_v38 = vpop.f32.mrb[2].mxu0  ;;  %s934_s8 = scalar_lea.vmem %s933_s7, 512 }
 0x1e9   : > { %v334_v39 = vpop.f32.mrb[3].mxu0 }
 0x1eb   : > { %375 = vrot.lane.b32.xlu0 %v369_v13, %s1012_s24 }
 0x259   : > { %v364_v14 = vpop.permute.xlu0 %363 }
 0x25a   : > { %368 = vst.msk [vmem:[#allocation3 + $0x8] sm:$0xff] %vm231_vm1, %v364_v14  ;;  %v362_v15 = vpop.permute.xlu1 %361 }
 0x25b   : > { %367 = vst.msk [vmem:[#allocation3] sm:$0xff] %vm231_vm1, %v362_v15 }
 0x25d   : > { %v376_v16 = vpop.permute.xlu0 %375 }
 0x25e   : > { %815 = vmatprep.mubr.msk.f32.mxu1 %vm387_vm3, %v376_v16 }
 0x261   : > { %v372_v17 = vld [vmem:[#allocation3 + $0x8] sm:$0xff] }
 0x262   : > { %v371_v18 = vld [vmem:[#allocation3] sm:$0xff] }
 0x263   : > { %v921_v19 = vpack.i.bf16 %v372_v17, %v371_v18  ;;  %v840_v20 = vpack.c.bf16 %v372_v17, %v371_v18 }
 0x265   : > { %922 = vrot.lane.b32.xlu0 %v921_v19, %s1010_s11  ;;  %917 = vrot.lane.b32.xlu1 %v921_v19, %s1011_s12 }
 0x269   : > { %377 = vrot.lane.b32.xlu1 %v370_v21, %s1012_s24  ;;  %548 = vrot.lane.b32.xlu0 %v370_v21, %s1013_s30  ;;  %s779_s24 = sshll.u32 %s998_s18, 8  ;;  %s928_s18 = scalar_lea.vmem %s1151_s22, 256 }
 0x26a   : > { %p929_p12 = scmp.ne.s32.totalorder %s1151_s22, %s928_s18  ;;  %p936_p2 = scmp.lt.s32.totalorder %s934_s8, %s928_s18 }
 0x26c   : > { %p930_p13 = pnand %p929_p12, %p1083_p4  ;;  %p937_p3 = por %p936_p2, %p935_p1 }
 0x26d   : > { %546 = vrot.lane.b32.xlu1 %v369_v13, %s1013_s30  ;;  %354 = vperm.xlu0 %927, %v346_v24   ;;  %s1149_s30 = scalar_lea.hbm %s1203_s4, %s779_s24 }
 0x26e   : > { %p931_p0 = pneg %p930_p13 }
 0x270   : > { %p938_p5 = pnand %p937_p3, %p931_p0 }
 0x271   : > { %349 = vperm.xlu1 %926, %v345_v25  }
 0x2d7   : > { %v918_v27 = vpop.permute.xlu1 %917  ;;  %v923_v30 = vpop.permute.xlu0 %922 }
 0x2d8   : > { %v920_v28 = vunpack.i.h.bf16 %v918_v27  ;;  %v919_v29 = vunpack.i.l.bf16 %v918_v27  ;;  %v925_v32 = vunpack.i.h.bf16 %v923_v30  ;;  %v924_v33 = vunpack.i.l.bf16 %v923_v30 }
 0x2da   : > { %v836_v31 = vpack.c.bf16 %v920_v28, %v919_v29  ;;  %v844_v35 = vpack.c.bf16 %v925_v32, %v924_v33 }
 0x2db   : > { %v378_v34 = vpop.permute.xlu1 %377  ;;  %v549_v37 = vpop.permute.xlu0 %548 }
 0x2dc   : > { %837 = vmatprep.subr.bf16.mxu1 %v836_v31 }
 0x2dd   : > { %839 = vmatpush3.bf16.msra.mxu1 %v836_v31 }
 0x2de   : > { %841 = vmatprep.subr.bf16.mxu1 %v840_v20 }
 0x2df   : > { %v547_v36 = vpop.permute.xlu1 %546 }
 0x2e0   : > { %816 = vmatmul.mubr.msk.f32.vlgmr.msra.gmra.mrb[0].mxu1 %vm387_vm3, %v378_v34 }
 0x2e1   : > { %843 = vmatpush3.bf16.msra.mxu1 %v840_v20  ;;  %822 = vmatprep.mubr.msk.f32.mxu1 %vm387_vm3, %v369_v13 }
 0x2e2   : > { %845 = vmatprep.subr.bf16.mxu1 %v844_v35 }
 0x2e8   : > { %823 = vmatmul.mubr.msk.f32.vlgmr.msra.gmra.mrb[0].mxu1 %vm387_vm3, %v370_v21 }
 0x2e9   : > { %847 = vmatpush3.bf16.msra.mxu1 %v844_v35  ;;  %829 = vmatprep.mubr.msk.f32.mxu1 %vm387_vm3, %v547_v36 }
 0x2ec   : > { %v355_v40 = vpop.permute.xlu0 %354 }
 0x2ed   : > { %v358_v42 = vadd.f32 %v810_v38, %v355_v40 }
 0x2f0   : > { %830 = vmatmul.mubr.msk.f32.vlgmr.msra.gmra.mrb[0].mxu1 %vm387_vm3, %v549_v37  ;;  %v350_v41 = vpop.permute.xlu1 %349 }
 0x2f1   : > { %v357_v44 = vadd.f32 %v350_v41, %v334_v39 }
 0x3c3   : > { %v831_v43 = vpop.f32.mrb[0].mxu1 }
 0x3c4   : > { %v638_v45 = vmax.f32 %v831_v43, 0.0  ;;  %v626_v46 = vpop.f32.mrb[1].mxu1 }
 0x3c5   : > { %v637_v47 = vmax.f32 %v626_v46, 0.0 }
 0x3c6   : > { %v640_v48 = vadd.f32 %v638_v45, %v358_v42 }
 0x3c7   : > { %v639_v49 = vadd.f32 %v637_v47, %v357_v44 }
 0x3c8   : > { %643 = vst.msk [vmem:[%s210_s21 + $0x8] sm:$0xff] %vm641_vm4, %v640_v48 }
 0x3c9   : > { %642 = vst.msk [vmem:[%s210_s21] sm:$0xff] %vm641_vm4, %v639_v49 }
 0x3ca   : > { %941 = shalt.err (!%p938_p5)
}
 0x3cb   : > { %s942_s9 = scalar_lea.hbm %s1149_s30, 256  ;;  %s946_s12 = scalar_lea.hbm %s1203_s4, 512 }
 0x3cc   : > { %p943_p6 = scmp.ne.s32.totalorder %s1149_s30, %s942_s9  ;;  %p947_p10 = scmp.lt.u32.totalorder %s1149_s30, %s1203_s4 }
 0x3cd   : > { %p948_p11 = scmp.lt.u32.totalorder %s946_s12, %s942_s9  ;;  %p950_p13 = scmp.lt.u32.totalorder %s942_s9, %s1149_s30 }
 0x3ce   : > { %p944_p7 = pnand %p943_p6, %p1083_p4 }
 0x3cf   : > { %p949_p12 = por %p948_p11, %p947_p10 }
 0x3d0   : > { %p945_p9 = pneg %p944_p7 }
 0x3d1   : > { %p951_p0 = por %p950_p13, %p949_p12 }
 0x3d3   : > { %p952_p1 = pnand %p951_p0, %p945_p9 }
 0x3d5   : > { %955 = shalt.err (!%p952_p1)
}
 0x3d6   : > { %s1016_s21 = smov 128   ;;  %s1017_s24 = smov 8  }
 0x3d7   : > { %852 = dma.vmem_to_hbm [thread:$0]  (%p1083_p4), %s1151_s22, 256, %s1149_s30, %s1153_s5, %s1016_s21, %s1016_s21, %s1017_s24  }
 0x3d8 PF: > { %p858_p2 = scmp.ge.s32.totalorder %s1006_s20, 2  ;;  %s697_s26 = sand.u32 1, %s986_s15  }
 0x3d9   : > { %s698_s29 = scalar_lea.sflag [#allocation5], %s697_s26 }
 0x3da   : > { %p855_p3 = pnand %p858_p2, %p1090_p8 }
 0x3dc   : > { %981 = dma.done.wait (!%p855_p3), %s698_s29, 256  }
 0x3dd   : > { %983 = vsyncadd (!%p855_p3), %s698_s29, 4294967040  ;;  %s17_s20 = sadd.s32 1, %s1006_s20   ;;  %s1206_s15 = smov %s990_s16 }
 0x3de   : > { %p14_p5 = scmp.ge.s32.totalorder %s17_s20, 4   ;;  %s1207_s16 = smov %s994_s17 }
 0x3df   : > { %s1208_s17 = smov %s1096_s28  ;;  %s1209_s18 = smov %s1002_s19 }
 0x3e0   : > { %s1210_s19 = smov %s1212_s23  ;;  %16 = sbr.rel (!%p14_p5) target bundleno = 4 (0x4), region = 79 }
 0x3e7   :  { %703 = vsyncpa [#allocation5], 1 }
 0x3e8   :  { %705 = vsyncpa [#allocation5 + $0x1], 1 }

</bundles_post_ra>
